<compile_context>
chip_gen: v7x
topology: tpu7x:2x2x1
jax: 0.10.0
libtpu: 0.0.40
codegen_flags: <defaults>
</compile_context>

<pallas_src>
import jax
import jax.numpy as jnp
from jax.experimental import pallas as pl
from jax.experimental.pallas import tpu as pltpu


def _make_listmle_kernel(nc: int, lc: int, n_rows: int):
    """Kernel over one (TB, L) batch tile; accumulates into the (1,1) output."""
    inv_rows = 1.0 / float(n_rows)

    def kernel(pred_ref, tri_ref, out_ref):
        step = pl.program_id(0)

        @pl.when(step == 0)
        def _init():
            out_ref[...] = jnp.zeros_like(out_ref)

        tb = pred_ref.shape[0]
        L = pred_ref.shape[1]
        tri = tri_ref[...]          # (lc, lc), exact 0/1 (f32 or bf16)
        mm_dtype = tri.dtype

        if nc == 1:
            # Small / un-chunked list dim: one triangular matmul.
            chunk = pred_ref[...]                                   # (tb, L) f32
            m = jnp.max(chunk, axis=1, keepdims=True)               # (tb, 1)
            y = jnp.exp(chunk - m)                                  # f32 (EUP)
            rev = jnp.dot(y.astype(mm_dtype), tri,
                          preferred_element_type=jnp.float32)       # (tb, L) f32
            log_sum = jnp.sum(jnp.log(rev), axis=1, keepdims=True)  # (tb, 1)
            pred_sum = jnp.sum(chunk, axis=1, keepdims=True)        # (tb, 1)
        else:
            # Pass 1: per-row max over 128-aligned chunks.
            def max_body(i, m_acc):
                start = pl.multiple_of(i * lc, 128)
                c = pred_ref[:, pl.ds(start, lc)]
                return jnp.maximum(m_acc, jnp.max(c, axis=1, keepdims=True))

            m = jax.lax.fori_loop(
                0, nc, max_body,
                jnp.full((tb, 1), -jnp.inf, dtype=jnp.float32))

            # Pass 2: blocked reverse cumsum; carry = suffix total of later chunks.
            def rev_body(i, state):
                carry, log_sum, pred_sum = state
                c = nc - 1 - i                                      # last chunk first
                start = pl.multiple_of(c * lc, 128)
                ch = pred_ref[:, pl.ds(start, lc)]                  # (tb, lc) f32
                y = jnp.exp(ch - m)                                 # f32 (EUP)
                rev = jnp.dot(y.astype(mm_dtype), tri,
                              preferred_element_type=jnp.float32) + carry
                log_sum = log_sum + jnp.sum(jnp.log(rev), axis=1, keepdims=True)
                pred_sum = pred_sum + jnp.sum(ch, axis=1, keepdims=True)
                carry = rev[:, 0:1]   # total of this chunk + later chunks
                return (carry, log_sum, pred_sum)

            zeros = jnp.zeros((tb, 1), dtype=jnp.float32)
            _, log_sum, pred_sum = jax.lax.fori_loop(
                0, nc, rev_body, (zeros, zeros, zeros))

        # Fused per-row loss: sum_j log(rev_j) + L*m - sum_j pred_j
        row_loss = log_sum + jnp.float32(L) * m - pred_sum          # (tb, 1)
        out_ref[...] += jnp.sum(row_loss, axis=0, keepdims=True)    # (1, 1)

        @pl.when(step == pl.num_programs(0) - 1)
        def _finalize():
            out_ref[...] = out_ref[...] * jnp.float32(inv_rows)

    return kernel


def _choose_batch_tile(B, requested=None, cap=256):
    if requested is not None:
        assert B % requested == 0 and (requested % 8 == 0 or requested == B), (
            "batch_tile must divide B and be a multiple of 8 (or equal B)")
        return requested
    if B <= cap:
        return B
    start = (min(cap, B) // 8) * 8
    for tb in range(start, 0, -8):
        if B % tb == 0:
            return tb
    return B


def list_wise_listmle_loss(pred, true, *, batch_tile=None, lane_chunk=256,
                           mxu_bf16=False):
    """JAX/Pallas equivalent of list_wise_listmle.forward(pred, true)."""
    pred = pred.astype(jnp.float32)
    true = true.astype(jnp.float32)
    B, L = pred.shape

    # Glue (data-dependent permutation): per-row descending argsort of `true`
    # + gather of `pred`.  No clean Pallas equivalent -> plain JAX / XLA.
    idx = jnp.argsort(-true, axis=1)
    pred_sorted = jnp.take_along_axis(pred, idx, axis=1)

    # List-dim chunking (blocked suffix sum) when L is large and 128-aligned.
    if L > lane_chunk and lane_chunk % 128 == 0 and L % lane_chunk == 0:
        lc = lane_chunk
    else:
        lc = L
    nc = L // lc

    # Batch tiling.
    tb = _choose_batch_tile(B, batch_tile)
    num_tiles = B // tb

    # Triangular ones matrix built once, passed as a resident kernel input.
    # bf16 storage is exact for 0/1; bf16 operands feed the v6e/v7x MXU fast path.
    op_dtype = jnp.bfloat16 if mxu_bf16 else jnp.float32
    ar = jnp.arange(lc, dtype=jnp.int32)
    tri = (ar[:, None] >= ar[None, :]).astype(op_dtype)             # (lc, lc)

    # Explicit VMEM budget (double-buffered pred tile + resident tri + temps).
    tri_bytes = lc * lc * jnp.dtype(op_dtype).itemsize
    needed = 2 * tb * L * 4 + 2 * tri_bytes + 8 * tb * lc * 4 + (1 << 20)
    vmem_limit = int(min(max(needed, 16 * 1024 * 1024), 48 * 1024 * 1024))

    kernel = _make_listmle_kernel(nc=nc, lc=lc, n_rows=B)

    out = pl.pallas_call(
        kernel,
        out_shape=jax.ShapeDtypeStruct((1, 1), jnp.float32),
        grid=(num_tiles,),
        in_specs=[
            pl.BlockSpec((tb, L), lambda i: (i, 0)),     # batch tile
            pl.BlockSpec((lc, lc), lambda i: (0, 0)),    # tri: resident block
        ],
        out_specs=pl.BlockSpec((1, 1), lambda i: (0, 0)),  # resident accumulator
        compiler_params=pltpu.CompilerParams(
            dimension_semantics=("arbitrary",),
            vmem_limit_bytes=vmem_limit,
        ),
    )(pred_sorted, tri)
    return out[0, 0]


def _reference_loss(pred, true):
    """Pure-JAX reference for a silent correctness check."""
    pred = pred.astype(jnp.float32)
    idx = jnp.argsort(-true.astype(jnp.float32), axis=1)
    p = jnp.take_along_axis(pred, idx, axis=1)
    m = jnp.max(p, axis=1, keepdims=True)
    y = jnp.exp(p - m)
    rev = jnp.flip(jnp.cumsum(jnp.flip(y, axis=1), axis=1), axis=1)
    lcse = jnp.log(rev) + m
    return jnp.mean(jnp.sum(lcse - p, axis=1))


if __name__ == "__main__":
    key = jax.random.PRNGKey(0)
    k1, k2, k3, k4 = jax.random.split(key, 4)

    # 1) Small shape matching the module (batch=2, list length=8): single tile,
    #    un-chunked path, f32 matmul.
    B, L = 2, 8
    pred = jax.random.normal(k1, (B, L), dtype=jnp.float32)
    true = jax.random.normal(k2, (B, L), dtype=jnp.float32)
    loss = jax.block_until_ready(list_wise_listmle_loss(pred, true))
    ref = jax.block_until_ready(_reference_loss(pred, true))
    assert jnp.allclose(loss, ref, atol=1e-5, rtol=1e-5), (loss, ref)

    # 2) Larger shape exercising batch tiling (grid of 4) + blocked suffix sum
    #    (two 128-lane chunks), still f32 matmul operands.
    B2, L2 = 32, 256
    pred2 = jax.random.normal(k3, (B2, L2), dtype=jnp.float32)
    true2 = jax.random.normal(k4, (B2, L2), dtype=jnp.float32)
    loss2 = jax.block_until_ready(
        list_wise_listmle_loss(pred2, true2, batch_tile=8, lane_chunk=128))
    ref2 = jax.block_until_ready(_reference_loss(pred2, true2))
    assert jnp.allclose(loss2, ref2, atol=1e-3, rtol=1e-4), (loss2, ref2)

    # 3) bf16 MXU operands (v6e/v7x fast path; tri exact, y quantized) —
    #    validated against the f32 reference with a loose tolerance.
    loss3 = jax.block_until_ready(
        list_wise_listmle_loss(pred2, true2, batch_tile=8, lane_chunk=128,
                               mxu_bf16=True))
    assert jnp.allclose(loss3, ref2, atol=2.0, rtol=3e-2), (loss3, ref2)

    print("KERNEL_OK")
</pallas_src>

<mosaic_0001>
module attributes {stable_mosaic.version = 11 : i64} {
  func.func @kernel(%arg0: i32, %arg1: memref<2x8xf32, #tpu.memory_space<vmem>>, %arg2: memref<8x8xf32, #tpu.memory_space<vmem>>, %arg3: memref<1x1xf32, #tpu.memory_space<vmem>>) attributes {dimension_semantics = [#tpu.dimension_semantics<arbitrary>], iteration_bounds = array<i64: 1>, scalar_prefetch = 0 : i64, scratch_operands = 0 : i64, tpu.core_type = #tpu.core_type<tc>, window_params = [{transform_indices = @transform_0, window_bounds = array<i64: 2, 8>}, {pipeline_mode = #tpu.pipeline_mode<synchronous>, transform_indices = @transform_1, window_bounds = array<i64: 8, 8>}, {pipeline_mode = #tpu.pipeline_mode<synchronous>, transform_indices = @transform_2, window_bounds = array<i64: 1, 1>}]} {
    %c0_i32 = arith.constant 0 : i32
    %0 = arith.cmpi eq, %arg0, %c0_i32 : i32
    %1 = arith.extui %0 : i1 to i32
    %c0_i32_0 = arith.constant 0 : i32
    %2 = arith.cmpi ne, %1, %c0_i32_0 : i32
    scf.if %2 {
      %cst_15 = arith.constant 0.000000e+00 : f32
      %28 = vector.broadcast %cst_15 : f32 to vector<1x1xf32>
      %c0_16 = arith.constant 0 : index
      %c0_17 = arith.constant 0 : index
      %29 = vector.load %arg3[%c0_16, %c0_17] : memref<1x1xf32, #tpu.memory_space<vmem>>, vector<1x1xf32>
      tpu.vector_store %arg3[%c0_16, %c0_17], %28 {strides = array<i32>} : memref<1x1xf32, #tpu.memory_space<vmem>>, vector<1x1xf32>,
    } else {
    }
    %c0 = arith.constant 0 : index
    %c0_1 = arith.constant 0 : index
    %3 = vector.load %arg2[%c0, %c0_1] : memref<8x8xf32, #tpu.memory_space<vmem>>, vector<8x8xf32>
    %c0_2 = arith.constant 0 : index
    %c0_3 = arith.constant 0 : index
    %4 = vector.load %arg1[%c0_2, %c0_3] : memref<2x8xf32, #tpu.memory_space<vmem>>, vector<2x8xf32>
    %cst = arith.constant dense<0xFF800000> : vector<2xf32>
    %5 = vector.multi_reduction <maximumf>, %4, %cst [1] : vector<2x8xf32> to vector<2xf32>
    %6 = vector.shape_cast %5 : vector<2xf32> to vector<2x1xf32>
    %7 = vector.broadcast %6 : vector<2x1xf32> to vector<2x8xf32>
    %8 = arith.subf %4, %7 : vector<2x8xf32>
    %9 = math.exp %8 : vector<2x8xf32>
    %cst_4 = arith.constant dense<0.000000e+00> : vector<2x8xf32>
    %10 = tpu.matmul %9, %3, %cst_4 {dimension_numbers = #tpu.dot_dimension_numbers<[1], [0], [0], [1], [0, 0, 1, 1], [], []>} : vector<2x8xf32>, vector<8x8xf32>, vector<2x8xf32> -> vector<2x8xf32>
    %11 = math.log %10 : vector<2x8xf32>
    %cst_5 = arith.constant dense<0.000000e+00> : vector<2xf32>
    %12 = vector.multi_reduction <add>, %11, %cst_5 [1] : vector<2x8xf32> to vector<2xf32>
    %13 = vector.shape_cast %12 : vector<2xf32> to vector<2x1xf32>
    %cst_6 = arith.constant dense<0.000000e+00> : vector<2xf32>
    %14 = vector.multi_reduction <add>, %4, %cst_6 [1] : vector<2x8xf32> to vector<2xf32>
    %15 = vector.shape_cast %14 : vector<2xf32> to vector<2x1xf32>
    %cst_7 = arith.constant 8.000000e+00 : f32
    %16 = vector.broadcast %cst_7 : f32 to vector<2x1xf32>
    %17 = arith.mulf %16, %6 : vector<2x1xf32>
    %18 = arith.addf %13, %17 : vector<2x1xf32>
    %19 = arith.subf %18, %15 : vector<2x1xf32>
    %c0_8 = arith.constant 0 : index
    %c0_9 = arith.constant 0 : index
    %20 = vector.load %arg3[%c0_8, %c0_9] : memref<1x1xf32, #tpu.memory_space<vmem>>, vector<1x1xf32>
    %cst_10 = arith.constant dense<0.000000e+00> : vector<1xf32>
    %21 = vector.multi_reduction <add>, %19, %cst_10 [0] : vector<2x1xf32> to vector<1xf32>
    %22 = vector.shape_cast %21 : vector<1xf32> to vector<1x1xf32>
    %23 = arith.addf %20, %22 : vector<1x1xf32>
    %c0_11 = arith.constant 0 : index
    %c0_12 = arith.constant 0 : index
    %24 = vector.load %arg3[%c0_11, %c0_12] : memref<1x1xf32, #tpu.memory_space<vmem>>, vector<1x1xf32>
    tpu.vector_store %arg3[%c0_11, %c0_12], %23 {strides = array<i32>} : memref<1x1xf32, #tpu.memory_space<vmem>>, vector<1x1xf32>,
    %c0_i32_13 = arith.constant 0 : i32
    %25 = arith.cmpi eq, %arg0, %c0_i32_13 : i32
    %26 = arith.extui %25 : i1 to i32
    %c0_i32_14 = arith.constant 0 : i32
    %27 = arith.cmpi ne, %26, %c0_i32_14 : i32
    scf.if %27 {
      %c0_15 = arith.constant 0 : index
      %c0_16 = arith.constant 0 : index
      %28 = vector.load %arg3[%c0_15, %c0_16] : memref<1x1xf32, #tpu.memory_space<vmem>>, vector<1x1xf32>
      %cst_17 = arith.constant 5.000000e-01 : f32
      %29 = vector.broadcast %cst_17 : f32 to vector<1x1xf32>
      %30 = arith.mulf %28, %29 : vector<1x1xf32>
      %c0_18 = arith.constant 0 : index
      %c0_19 = arith.constant 0 : index
      %31 = vector.load %arg3[%c0_18, %c0_19] : memref<1x1xf32, #tpu.memory_space<vmem>>, vector<1x1xf32>
      tpu.vector_store %arg3[%c0_18, %c0_19], %30 {strides = array<i32>} : memref<1x1xf32, #tpu.memory_space<vmem>>, vector<1x1xf32>,
    } else {
    }
    return
  }
  func.func @transform_0(%arg0: i32) -> (i32, i32) {
    %c0_i32 = arith.constant 0 : i32
    %c0_i32_0 = arith.constant 0 : i32
    return %arg0, %c0_i32 : i32, i32
  }
  func.func @transform_1(%arg0: i32) -> (i32, i32) {
    %c0_i32 = arith.constant 0 : i32
    %c0_i32_0 = arith.constant 0 : i32
    %c0_i32_1 = arith.constant 0 : i32
    return %c0_i32, %c0_i32_0 : i32, i32
  }
  func.func @transform_2(%arg0: i32) -> (i32, i32) {
    %c0_i32 = arith.constant 0 : i32
    %c0_i32_0 = arith.constant 0 : i32
    %c0_i32_1 = arith.constant 0 : i32
    return %c0_i32, %c0_i32_0 : i32, i32
  }
}

</mosaic_0001>

<bundles_post_ra>
// kernel: tpu_custom_call.1
= control target key start
LH: loop header
LB: loop body
LE: loop exit
PB: predicated region body
PF: predicated region fallthrough
CT: control target
= control target key end

     0   :  { %7 = vsyncpa [#allocation3], 0  ;;  %s321_s0 = inlined_call_operand.hbm [shape: f32[2,8], index: 0, kind: input, shape index: {}]   ;;  %s322_s1 = inlined_call_operand.hbm [shape: f32[8,8], index: 1, kind: input, shape index: {}]   ;;  %s323_s2 = inlined_call_operand.hbm [shape: f32[1,1], index: 2, kind: output, shape index: {}]  }
   0x1   :  { %8 = vsyncpa [#allocation6], 0 }
   0x2   :  { %9 = vsyncpa [#allocation4], 0  ;;  %s259_s9 = smov [#allocation2]   ;;  %s260_s11 = smov [#allocation5]  }
   0x3   :  { %s16_s10 = sshll.u32 %s259_s9, 4  ;;  %s26_s12 = sshll.u32 %s260_s11, 4  ;;  %s17_s10 = int_to_ptr.vmem [resolvable:$true] %s16_s10  ;;  %s27_s12 = int_to_ptr.vmem [resolvable:$true] %s26_s12 }
   0x4   :  { %s187_s15 = scalar_lea.hbm %s321_s0, 32 }
   0x5   :  { %p188_p0 = scmp.ne.s32.totalorder %s321_s0, %s187_s15  ;;  %p191_p1 = scmp.lt.u32.totalorder %s187_s15, %s321_s0 }
   0x7   :  { %p193_p2 = pnand %p191_p1, %p188_p0 }
   0x9   :  { %196 = shalt.err (!%p193_p2)
}
   0xa   :  { %s197_s20 = scalar_lea.vmem %s17_s10, 32  ;;  %p202_p4 = scmp.lt.s32.totalorder %s17_s10, %s17_s10 }
   0xb   :  { %p198_p3 = scmp.ne.s32.totalorder %s17_s10, %s197_s20  ;;  %p203_p5 = scmp.lt.s32.totalorder %s197_s20, %s197_s20 }
   0xd   :  { %p204_p6 = por %p203_p5, %p202_p4 }
   0xf   :  { %p205_p7 = pnand %p204_p6, %p198_p3 }
  0x11   :  { %208 = shalt.err (!%p205_p7)
}
  0x12   :  { %19 = dma.hbm_to_vmem [thread:$0]  %s321_s0, 32, %s17_s10, [#allocation3]  }
  0x13   :  { %s209_s25 = scalar_lea.hbm %s322_s1, 128 }
  0x14   :  { %p210_p8 = scmp.ne.s32.totalorder %s322_s1, %s209_s25  ;;  %p213_p9 = scmp.lt.u32.totalorder %s209_s25, %s322_s1 }
  0x16   :  { %p215_p10 = pnand %p213_p9, %p210_p8 }
  0x18   :  { %218 = shalt.err (!%p215_p10)
}
  0x19   :  { %s219_s30 = scalar_lea.vmem %s27_s12, 128  ;;  %p224_p12 = scmp.lt.s32.totalorder %s27_s12, %s27_s12 }
  0x1a   :  { %p220_p11 = scmp.ne.s32.totalorder %s27_s12, %s219_s30  ;;  %p225_p13 = scmp.lt.s32.totalorder %s219_s30, %s219_s30 }
  0x1c   :  { %p226_p0 = por %p225_p13, %p224_p12 }
  0x1e   :  { %p227_p1 = pnand %p226_p0, %p220_p11 }
  0x20   :  { %230 = shalt.err (!%p227_p1)
}
  0x21   :  { %29 = dma.hbm_to_vmem [thread:$0]  %s322_s1, 128, %s27_s12, [#allocation6]  }
  0x22   :  { %253 = dma.done.wait [#allocation3], 32  }
  0x23   :  { %254 = vsyncadd [#allocation3], 4294967264 }
  0x24   :  { %255 = dma.done.wait [#allocation6], 128  }
  0x25   :  { %256 = vsyncadd [#allocation6], 4294967168  ;;  %vm44_vm0 = vcmask 58368   ;;  %v43_v0 = vld [vmem:[#allocation2] sm:$0x3]  ;;  %vm40_vm1 = vcmask 0  }
  0x26   :  { %v45_v1 = vsel %vm44_vm0, %v43_v0, -inf  ;;  %v42_v2 = vld [vmem:[#allocation5] sm:$0xff]  ;;  %v261_v3 = vmov 0.0   ;;  %vm262_vm2 = vmmov 0   ;;  %vm51_vm3 = vcmask 64512   ;;  %s263_s1 = smov [#allocation7]  }
  0x27   :  { %46 = vmax.xlane.f32.xlu0 %v45_v1  ;;  %41 = vst.msk [vmem:[#allocation7] sm:$0x1] %vm40_vm1, %v261_v3  ;;  %173 = vmatprep.subr.mxu0 %v261_v3  ;;  %v130_v8 = vsel %vm44_vm0, %v43_v0, 0.0  ;;  %vm137_vm4 = vcmask 1041408   ;;  %s160_s4 = sshll.u32 %s263_s1, 4  ;;  %s161_s4 = int_to_ptr.vmem [resolvable:$true] %s160_s4 }
  0x28   :  { %175 = vmatprep.mubr.msk.f32.mxu0 %vm262_vm2, %v261_v3  ;;  %174 = vmatpush3.msra.mxu0 %v42_v2  ;;  %s231_s5 = scalar_lea.vmem %s161_s4, 16  ;;  %s235_s6 = scalar_lea.vmem %s161_s4, 32 }
  0x29   :  { %131 = vadd.xlane.f32.xlu1 %v130_v8  ;;  %p232_p2 = scmp.ne.s32.totalorder %s161_s4, %s231_s5  ;;  %p236_p3 = scmp.lt.s32.totalorder %s161_s4, %s161_s4 }
  0x2a   :  { %p237_p4 = scmp.lt.s32.totalorder %s235_s6, %s231_s5 }
  0x2c   :  { %p238_p5 = por %p237_p4, %p236_p3 }
  0x2e   :  { %v136_v25 = vld [vmem:[#allocation7] sm:$0x1]  ;;  %p239_p6 = pnand %p238_p5, %p232_p2 }
  0xb4   :  { %v47_v4 = vpop.xlane.xlu0 %46 }
  0xb5   :  { %v48_v5 = vsub.f32 %v43_v0, %v47_v4  ;;  %v133_v14 = vmul.f32 8.0, %v47_v4 }
  0xb6   :  { %v132_v16 = vpop.xlane.xlu1 %131 }
  0xb7   :  { %v49_v6 = vmul.f32 1.442695, %v48_v5 }
  0xb9   :  { %183 = vpow2.f32 %v49_v6 }
  0xc3   :  { %v184_v7 = vpop.eup %183 }
  0xc4   :  { %176 = vmatmul.mubr.msk.f32.vlgmr.msra.gmra.mrb[0].mxu0 %vm51_vm3, %v184_v7 }
 0x197   :  { %v121_v9 = vpop.f32.mrb[0].mxu0 }
 0x198   :  { %185 = vlog2.f32 %v121_v9  ;;  %v177_v10 = vpop.f32.mrb[1].mxu0 }
 0x1a2   :  { %v186_v11 = vpop.eup %185 }
 0x1a3   :  { %v126_v12 = vmul.f32 0.6931472, %v186_v11 }
 0x1a5   :  { %v127_v13 = vsel %vm44_vm0, %v126_v12, 0.0 }
 0x1a6   :  { %128 = vadd.xlane.f32.xlu0 %v127_v13 }
 0x233   :  { %v129_v15 = vpop.xlane.xlu0 %128 }
 0x234   :  { %v134_v17 = vadd.f32 %v133_v14, %v129_v15 }
 0x236   :  { %v135_v18 = vsub.f32 %v134_v17, %v132_v16 }
 0x238   :  { %v138_v19 = vsel %vm137_vm4, %v135_v18, 0.0 }
 0x239   :  { %v139_v20 = vrot.slane %v138_v19, 4 }
 0x23b   :  { %v140_v21 = vadd.f32 %v139_v20, %v138_v19 }
 0x23d   :  { %v141_v22 = vrot.slane %v140_v21, 2 }
 0x23f   :  { %v142_v23 = vadd.f32 %v141_v22, %v140_v21 }
 0x241   :  { %v143_v24 = vrot.slane %v142_v23, 1 }
 0x243   :  { %v144_v26 = vadd.f32 %v143_v24, %v142_v23 }
 0x245   :  { %v145_v27 = vadd.f32 %v144_v26, %v136_v25 }
 0x247   :  { %147 = vst.msk [vmem:[#allocation7] sm:$0x1] %vm40_vm1, %v145_v27 }
 0x24e   :  { %v151_v28 = vld [vmem:[#allocation7] sm:$0x1] }
 0x24f   :  { %v152_v29 = vmul.f32 0.5, %v151_v28 }
 0x251   :  { %153 = vst.msk [vmem:[#allocation7] sm:$0x1] %vm40_vm1, %v152_v29 }
 0x252   :  { %242 = shalt.err (!%p239_p6)
}
 0x253   :  { %s243_s9 = scalar_lea.hbm %s323_s2, 16 }
 0x254   :  { %p244_p7 = scmp.ne.s32.totalorder %s323_s2, %s243_s9  ;;  %p247_p8 = scmp.lt.u32.totalorder %s243_s9, %s323_s2 }
 0x256   :  { %p249_p9 = pnand %p247_p8, %p244_p7 }
 0x258   :  { %252 = shalt.err (!%p249_p9)
}
 0x259   :  { %163 = dma.vmem_to_hbm [thread:$0]  %s161_s4, 16, %s323_s2, [#allocation4]  }
 0x25a   :  { %257 = dma.done.wait [#allocation4], 16  }
 0x25b   :  { %258 = vsyncadd [#allocation4], 4294967280 }
 0x25c   :  { %167 = vsyncpa [#allocation3], 1 }
 0x25d   :  { %168 = vsyncpa [#allocation6], 1 }
 0x25e   :  { %169 = vsyncpa [#allocation4], 1 }

</bundles_post_ra>
